<compile_context>
chip_gen: v6e
topology: v6e:2x2x1
jax: 0.10.0
libtpu: 0.0.40
codegen_flags: <defaults>
</compile_context>

<pallas_src>
import functools

import jax
import jax.numpy as jnp
from jax.experimental import pallas as pl
from jax.experimental.pallas import tpu as pltpu


def _vmem_limit_and_budget():
    """(vmem_limit_bytes, tile-sizing budget) derived from the local chip."""
    try:
        cap = int(pltpu.get_tpu_info().vmem_capacity_bytes)
    except Exception:          # no queryable TPU info -> assume v7x's 64 MiB
        cap = 64 << 20
    cap = max(min(cap, 128 << 20), 32 << 20)
    limit = min((cap * 3) // 4, 100 << 20)          # 48 MiB on v7x, 96 on v5e/v6e
    budget = max(limit - (8 << 20), 8 << 20)        # headroom: out block, scratch
    return limit, budget


def _choose_tiles(nc, hw, itemsize, budget_bytes):
    """(row_tile, hw_tile) for the (N*C, H*W) view."""
    # Per streamed element: double-buffered native-dtype input block plus a
    # conservative ~16 B of f32 temporaries (cast/clamp/log/exp chain) that
    # Mosaic keeps live for the tile.
    per_elem = 2 * itemsize + 16
    max_elems = max(budget_bytes // per_elem, 8 * 128)

    # Spatial (reduction) tile: full extent when a >=128-row tile still fits,
    # otherwise a 128-multiple chunk handled by the in-kernel accumulator.
    if hw * 128 <= max_elems:
        hw_tile = hw
    else:
        hw_tile = max(128, min(((max_elems // 128) // 128) * 128, 8192))
        if hw_tile > hw:
            hw_tile = hw

    cap_rows = max(((max_elems // hw_tile) // 8) * 8, 8)
    if nc <= 128:
        row_tile = nc if nc <= cap_rows else max((cap_rows // 8) * 8, 8)
    else:
        # >= 4 row blocks on large problems so both v7x TensorCores get >= 2
        # pipelined steps; 128-multiples keep the output store lane-dense.
        target = min(cap_rows, max(128, -(-nc // 4)), 2048)
        row_tile = max(128, (target // 128) * 128)
    return row_tile, hw_tile


def _rows_to_lanes(col):
    """(R, 1) f32 per-row results -> (1, R) lane-major.

    Per 128-row chunk: place the values on the diagonal of a (128, 128) tile
    (one select per vreg) and multiply by ones(1, 128) on the MXU, which is
    otherwise idle in this kernel.  Small tail chunks (<128 rows) use a plain
    cross-sublane sum instead.
    # TODO(synk): a native lax.transpose / pltpu.einshape of the (128, 1)
    # chunk (XLU vxpose) would be cheaper still if Mosaic accepts that shape.
    """
    r = col.shape[0]
    pieces = []
    eye128 = None
    for start in range(0, r, 128):
        m = min(128, r - start)
        if m == 128:
            if eye128 is None:
                eye128 = (jax.lax.broadcasted_iota(jnp.int32, (128, 128), 0)
                          == jax.lax.broadcasted_iota(jnp.int32, (128, 128), 1))
            eye = eye128
        else:
            eye = (jax.lax.broadcasted_iota(jnp.int32, (m, m), 0)
                   == jax.lax.broadcasted_iota(jnp.int32, (m, m), 1))
        diag = jnp.where(eye, col[start:start + m, :], 0.0)        # (m, m)
        if m == 128:
            row = jnp.dot(jnp.ones((1, m), jnp.float32), diag,
                          preferred_element_type=jnp.float32)      # MXU: (1, m)
        else:
            row = jnp.sum(diag, axis=0, keepdims=True)             # (1, m)
        pieces.append(row)
    return pieces[0] if len(pieces) == 1 else jnp.concatenate(pieces, axis=1)


def gem_kernel(p_ref, x_ref, o_ref, acc_ref, *,
               eps, inv_hw, hw, hw_tile, mask_tail, compute_dtype):
    # p_ref: (1,) f32 in SMEM; x_ref: (row_tile, hw_tile) native dtype in VMEM;
    # o_ref: (1, 1, row_tile) f32 lane-dense output block;
    # acc_ref: (row_tile, 1) f32 running sum of clamp(x, eps)**p over H*W.
    k = pl.program_id(1)

    @pl.when(k == 0)
    def _():
        acc_ref[...] = jnp.zeros_like(acc_ref)

    p = p_ref[0]
    cd = jnp.dtype(compute_dtype)
    x = jnp.maximum(x_ref[...].astype(cd), jnp.asarray(eps, dtype=cd))
    # x ** p for x > 0  ==  exp(p * log(x))   (EUP transcendentals).
    # TODO(synk): on v6e/v7x a bf16 compute_dtype for bf16 inputs roughly
    # doubles EUP/VALU throughput (the bf16 stream is EUP-bound on v7x); gate
    # per generation (v5e has no bf16 EUP) and re-validate tolerances.
    xp = jnp.exp(jnp.log(x) * p.astype(cd)).astype(jnp.float32)
    if mask_tail:
        # Ragged last spatial block: zero the lanes past H*W before reducing.
        col = jax.lax.broadcasted_iota(jnp.int32, xp.shape, 1) + k * hw_tile
        xp = jnp.where(col < hw, xp, 0.0)
    acc_ref[...] += jnp.sum(xp, axis=-1, keepdims=True)

    @pl.when(k == pl.num_programs(1) - 1)
    def _():
        mean = acc_ref[...] * inv_hw                    # (row_tile, 1) f32, > 0
        res = jnp.exp(jnp.log(mean) * (1.0 / p))        # mean ** (1/p)
        o_ref[0] = _rows_to_lanes(res).astype(o_ref.dtype)


def gem_pool(x, p, *, eps=1e-6, compute_dtype=jnp.float32,
             row_tile=None, hw_tile=None):
    """x: (N, C, H, W) float array, p: (1,) float array.

    Returns (N, C) float32 (PyTorch promotes half inputs to f32 because p is
    an f32 parameter).
    """
    N, C, H, W = x.shape
    NC, HW = N * C, H * W
    x2d = x.reshape(NC, HW)            # free reshape, native dtype (no upcast pass)

    vmem_limit, budget = _vmem_limit_and_budget()
    auto_rt, auto_ht = _choose_tiles(NC, HW, x2d.dtype.itemsize, budget)
    row_tile = auto_rt if row_tile is None else row_tile
    hw_tile = auto_ht if hw_tile is None else hw_tile

    nb_rows = pl.cdiv(NC, row_tile)    # ragged row tail: rows are independent,
    nb_hw = pl.cdiv(HW, hw_tile)       # padded rows are sliced off afterwards
    mask_tail = (nb_hw * hw_tile) != HW

    kernel = functools.partial(
        gem_kernel, eps=float(eps), inv_hw=1.0 / HW, hw=HW, hw_tile=hw_tile,
        mask_tail=mask_tail, compute_dtype=compute_dtype)

    out = pl.pallas_call(
        kernel,
        out_shape=jax.ShapeDtypeStruct((nb_rows, 1, row_tile), jnp.float32),
        grid=(nb_rows, nb_hw),
        in_specs=[
            # GeM exponent p lives in SMEM (whole array, no blocking).
            pl.BlockSpec(memory_space=pltpu.MemorySpace.SMEM),
            # One tile of rows x one spatial chunk per step.
            pl.BlockSpec((row_tile, hw_tile), lambda i, k: (i, k)),
        ],
        # Lane-dense output row, revisited across the reduction axis k.
        out_specs=pl.BlockSpec((1, 1, row_tile), lambda i, k: (i, 0, 0)),
        scratch_shapes=[pltpu.VMEM((row_tile, 1), jnp.float32)],
        compiler_params=pltpu.CompilerParams(
            dimension_semantics=("parallel", "arbitrary"),
            vmem_limit_bytes=vmem_limit,
        ),
    )(p.astype(jnp.float32), x2d)

    return out.reshape(nb_rows * row_tile)[:NC].reshape(N, C)


def gem_reference(x, p, eps=1e-6):
    """Plain-JAX reference matching the PyTorch forward (f32 math)."""
    xp = jnp.maximum(x.astype(jnp.float32), eps) ** p[0]
    pooled = jnp.mean(xp, axis=(-2, -1))
    return pooled ** (1.0 / p[0])


if __name__ == "__main__":
    key = jax.random.PRNGKey(0)
    # Deterministic parameter init, same as nn.Parameter(torch.ones(1) * 3).
    p = jnp.ones((1,), dtype=jnp.float32) * 3.0
    eps = 1e-6

    # 1) Base case: f32, (2, 4, 16, 16) -> single grid step.
    x = jax.random.normal(key, (2, 4, 16, 16), dtype=jnp.float32)
    out = gem_pool(x, p, eps=eps)
    jax.block_until_ready(out)
    ref = gem_reference(x, p, eps=eps)
    assert out.shape == (2, 4) and out.dtype == jnp.float32
    assert jnp.allclose(out, ref, rtol=1e-4, atol=1e-5)

    # 2) Multi-row-block case (exercises the 128-row MXU relayout and the
    #    "parallel" row axis); bf16 input, f32 output (PyTorch promotion).
    xb = jax.random.normal(key, (2, 256, 8, 8), dtype=jnp.float32).astype(jnp.bfloat16)
    outb = gem_pool(xb, p, eps=eps)
    jax.block_until_ready(outb)
    refb = gem_reference(xb, p, eps=eps)
    assert outb.shape == (2, 256) and outb.dtype == jnp.float32
    assert jnp.allclose(outb, refb, rtol=1e-3, atol=1e-5)

    # 3) Multi-spatial-block case with a ragged (masked) reduction tail.
    xr = jax.random.normal(key, (2, 4, 10, 20), dtype=jnp.float32)
    outr = gem_pool(xr, p, eps=eps, hw_tile=128)
    jax.block_until_ready(outr)
    refr = gem_reference(xr, p, eps=eps)
    assert outr.shape == (2, 4) and outr.dtype == jnp.float32
    assert jnp.allclose(outr, refr, rtol=1e-4, atol=1e-5)

    print("KERNEL_OK")
</pallas_src>

<mosaic_0001>
module attributes {stable_mosaic.version = 11 : i64} {
  func.func @gem_kernel(%arg0: i32, %arg1: i32, %arg2: memref<1xf32, #tpu.memory_space<smem>>, %arg3: memref<8x256xf32, #tpu.memory_space<vmem>>, %arg4: memref<1x1x8xf32, #tpu.memory_space<vmem>>, %arg5: memref<8x1xf32, #tpu.memory_space<vmem>>) attributes {dimension_semantics = [#tpu.dimension_semantics<parallel>, #tpu.dimension_semantics<arbitrary>], iteration_bounds = array<i64: 1, 1>, scalar_prefetch = 0 : i64, scratch_operands = 1 : i64, tpu.core_type = #tpu.core_type<tc>, window_params = [{transform_indices = @transform_0, window_bounds = array<i64: 1>}, {transform_indices = @transform_1, window_bounds = array<i64: 8, 256>}, {transform_indices = @transform_2, window_bounds = array<i64: 1, 1, 8>}]} {
    %c0_i32 = arith.constant 0 : i32
    %0 = arith.cmpi eq, %arg1, %c0_i32 : i32
    %1 = arith.extui %0 : i1 to i32
    %c0_i32_0 = arith.constant 0 : i32
    %2 = arith.cmpi ne, %1, %c0_i32_0 : i32
    scf.if %2 {
      %cst_10 = arith.constant 0.000000e+00 : f32
      %19 = vector.broadcast %cst_10 : f32 to vector<8x1xf32>
      %c0_11 = arith.constant 0 : index
      %c0_12 = arith.constant 0 : index
      %20 = vector.load %arg5[%c0_11, %c0_12] : memref<8x1xf32, #tpu.memory_space<vmem>>, vector<8x1xf32>
      tpu.vector_store %arg5[%c0_11, %c0_12], %19 {strides = array<i32>} : memref<8x1xf32, #tpu.memory_space<vmem>>, vector<8x1xf32>,
    } else {
    }
    %c0 = arith.constant 0 : index
    %3 = memref.load %arg2[%c0] : memref<1xf32, #tpu.memory_space<smem>>
    %c0_1 = arith.constant 0 : index
    %c0_2 = arith.constant 0 : index
    %4 = vector.load %arg3[%c0_1, %c0_2] : memref<8x256xf32, #tpu.memory_space<vmem>>, vector<8x256xf32>
    %cst = arith.constant 9.99999997E-7 : f32
    %5 = vector.broadcast %cst : f32 to vector<8x256xf32>
    %6 = arith.maximumf %4, %5 : vector<8x256xf32>
    %7 = math.log %6 : vector<8x256xf32>
    %8 = vector.broadcast %3 : f32 to vector<8x256xf32>
    %9 = arith.mulf %7, %8 : vector<8x256xf32>
    %10 = math.exp %9 : vector<8x256xf32>
    %c0_3 = arith.constant 0 : index
    %c0_4 = arith.constant 0 : index
    %11 = vector.load %arg5[%c0_3, %c0_4] : memref<8x1xf32, #tpu.memory_space<vmem>>, vector<8x1xf32>
    %cst_5 = arith.constant dense<0.000000e+00> : vector<8xf32>
    %12 = vector.multi_reduction <add>, %10, %cst_5 [1] : vector<8x256xf32> to vector<8xf32>
    %13 = vector.shape_cast %12 : vector<8xf32> to vector<8x1xf32>
    %14 = arith.addf %11, %13 : vector<8x1xf32>
    %c0_6 = arith.constant 0 : index
    %c0_7 = arith.constant 0 : index
    %15 = vector.load %arg5[%c0_6, %c0_7] : memref<8x1xf32, #tpu.memory_space<vmem>>, vector<8x1xf32>
    tpu.vector_store %arg5[%c0_6, %c0_7], %14 {strides = array<i32>} : memref<8x1xf32, #tpu.memory_space<vmem>>, vector<8x1xf32>,
    %c0_i32_8 = arith.constant 0 : i32
    %16 = arith.cmpi eq, %arg1, %c0_i32_8 : i32
    %17 = arith.extui %16 : i1 to i32
    %c0_i32_9 = arith.constant 0 : i32
    %18 = arith.cmpi ne, %17, %c0_i32_9 : i32
    scf.if %18 {
      %c0_10 = arith.constant 0 : index
      %c0_11 = arith.constant 0 : index
      %19 = vector.load %arg5[%c0_10, %c0_11] : memref<8x1xf32, #tpu.memory_space<vmem>>, vector<8x1xf32>
      %cst_12 = arith.constant 3.906250e-03 : f32
      %20 = vector.broadcast %cst_12 : f32 to vector<8x1xf32>
      %21 = arith.mulf %19, %20 : vector<8x1xf32>
      %22 = math.log %21 : vector<8x1xf32>
      %cst_13 = arith.constant 1.000000e+00 : f32
      %23 = arith.divf %cst_13, %3 : f32
      %24 = vector.broadcast %23 : f32 to vector<8x1xf32>
      %25 = arith.mulf %22, %24 : vector<8x1xf32>
      %26 = math.exp %25 : vector<8x1xf32>
      %27 = tpu.iota {dimensions = array<i32: 0>} : vector<8x8xi32>
      %28 = tpu.iota {dimensions = array<i32: 1>} : vector<8x8xi32>
      %29 = arith.cmpi eq, %27, %28 : vector<8x8xi32>
      %cst_14 = arith.constant 0.000000e+00 : f32
      %30 = vector.shape_cast %26 : vector<8x1xf32> to vector<8x1xf32>
      %31 = vector.broadcast %30 : vector<8x1xf32> to vector<8x8xf32>
      %32 = vector.broadcast %cst_14 : f32 to vector<8x8xf32>
      %33 = arith.select %29, %31, %32 : vector<8x8xi1>, vector<8x8xf32>
      %cst_15 = arith.constant dense<0.000000e+00> : vector<8xf32>
      %34 = vector.multi_reduction <add>, %33, %cst_15 [0] : vector<8x8xf32> to vector<8xf32>
      %35 = vector.shape_cast %34 : vector<8xf32> to vector<1x8xf32>
      %c0_16 = arith.constant 0 : index
      %c0_17 = arith.constant 0 : index
      %c0_18 = arith.constant 0 : index
      %36 = vector.load %arg4[%c0_16, %c0_17, %c0_18] : memref<1x1x8xf32, #tpu.memory_space<vmem>>, vector<1x1x8xf32>
      %37 = vector.shape_cast %36 : vector<1x1x8xf32> to vector<1x8xf32>
      %38 = vector.shape_cast %35 : vector<1x8xf32> to vector<1x1x8xf32>
      tpu.vector_store %arg4[%c0_16, %c0_17, %c0_18], %38 {strides = array<i32>} : memref<1x1x8xf32, #tpu.memory_space<vmem>>, vector<1x1x8xf32>,
    } else {
    }
    return
  }
  func.func @transform_0(%arg0: i32, %arg1: i32) -> i32 {
    %c0_i32 = arith.constant 0 : i32
    %c0_i32_0 = arith.constant 0 : i32
    return %c0_i32 : i32
  }
  func.func @transform_1(%arg0: i32, %arg1: i32) -> (i32, i32) {
    %c0_i32 = arith.constant 0 : i32
    return %arg0, %arg1 : i32, i32
  }
  func.func @transform_2(%arg0: i32, %arg1: i32) -> (i32, i32, i32) {
    %c0_i32 = arith.constant 0 : i32
    %c0_i32_0 = arith.constant 0 : i32
    %c0_i32_1 = arith.constant 0 : i32
    return %arg0, %c0_i32, %c0_i32_0 : i32, i32, i32
  }
}

</mosaic_0001>

<bundles_post_ra>
// kernel: tpu_custom_call.1
= control target key start
LH: loop header
LB: loop body
LE: loop exit
PB: predicated region body
PF: predicated region fallthrough
CT: control target
= control target key end

     0   :  { %8 = vsyncpa [#allocation5], 0  ;;  %s199_s0 = inlined_call_operand.<no memory space> [shape: f32[1], index: 0, kind: input, shape index: {}]   ;;  %s200_s1 = inlined_call_operand.hbm [shape: f32[8,256], index: 1, kind: input, shape index: {}]   ;;  %s201_s2 = inlined_call_operand.hbm [shape: f32[1,1,8], index: 2, kind: output, shape index: {}]  }
   0x1   :  { %9 = vsyncpa [#allocation6], 0  ;;  %s169_s9 = smov [#allocation4]  }
   0x2   :  { %s18_s10 = sshll.u32 %s169_s9, 4  ;;  %s19_s10 = int_to_ptr.vmem [resolvable:$true] %s18_s10 }
   0x3   :  { %s133_s11 = scalar_lea.vmem %s19_s10, 256  ;;  %p138_p1 = scmp.lt.s32.totalorder %s19_s10, %s19_s10 }
   0x4   :  { %p134_p0 = scmp.ne.s32.totalorder %s19_s10, %s133_s11  ;;  %p139_p2 = scmp.lt.s32.totalorder %s133_s11, %s133_s11 }
   0x6   :  { %p140_p3 = por %p139_p2, %p138_p1 }
   0x8   :  { %p141_p4 = pnand %p140_p3, %p134_p0 }
   0xa   :  { %144 = shalt.err (!%p141_p4)
}
   0xb   :  { %21 = dma.hbm_to_vmem [thread:$0]  %s200_s1, 256, %s19_s10, [#allocation5]  }
   0xc   :  { %165 = dma.done.wait [#allocation5], 256  }
   0xd   :  { %166 = vsyncadd [#allocation5], 4294967040  ;;  %v40_v0 = vstv %s199_s0  ;;  %vm29_vm0 = vcmask 7168   ;;  %v170_v1 = vmov 0.0   ;;  %v32_v2 = vld [vmem:[#allocation4] sm:$0xff]  ;;  %v33_v3 = vld [vmem:[#allocation4 + $0x8] sm:$0xff]  ;;  %v68_v30 = vlaneseq }
   0xe   :  { %111 = vrcp.f32 %v40_v0  ;;  %30 = vst.msk [vmem:[#allocation2] sm:$0xff] %vm29_vm0, %v170_v1  ;;  %v34_v4 = vmax.f32 %v32_v2, 1e-06  ;;  %v35_v5 = vmax.f32 %v33_v3, 1e-06  ;;  %v171_v18 = vmov 0  }
   0xf   :  { %110 = vset.pattern.permute.xlu0 %v171_v18  ;;  %v69_v31 = vshrl.u32 %v68_v30, 7  ;;  %v71_v32 = vand.u32 127, %v68_v30  ;;  %vm79_vm2 = vcmask 64512   ;;  %s172_s1 = smov [#allocation7]   ;;  %vm87_vm3 = vcmask 57344  }
  0x10   :  { %113 = vlog2.f32 %v34_v4  ;;  %s95_s16 = sshll.u32 %s172_s1, 4  ;;  %s96_s16 = int_to_ptr.vmem [resolvable:$true] %s95_s16 }
  0x11   :  { %115 = vlog2.f32 %v35_v5  ;;  %vm72_vm1 = vcmp.eq.s32.totalorder %v69_v31, %v71_v32  ;;  %s145_s17 = scalar_lea.vmem %s96_s16, 16  ;;  %s149_s18 = scalar_lea.vmem %s96_s16, 32 }
  0x12   :  { %p146_p5 = scmp.ne.s32.totalorder %s96_s16, %s145_s17  ;;  %p150_p6 = scmp.lt.s32.totalorder %s96_s16, %s96_s16 }
  0x13   :  { %p151_p7 = scmp.lt.s32.totalorder %s149_s18, %s145_s17 }
  0x15   :  { %v47_v19 = vld [vmem:[#allocation2] sm:$0xff]  ;;  %p152_p8 = por %p151_p7, %p150_p6 }
  0x17   :  { %p153_p9 = pnand %p152_p8, %p146_p5 }
  0x1b   :  { %v112_v6 = vpop.eup %111 }
  0x1c   :  { %104 = vpush %v112_v6 }
  0x1d   :  { %v114_v7 = vpop.eup %113 }
  0x1e   :  { %v116_v8 = vpop.eup %115  ;;  %v37_v9 = vmul.f32 0.6931472, %v114_v7 }
  0x1f   :  { %v39_v10 = vmul.f32 0.6931472, %v116_v8 }
  0x20   :  { %v41_v11 = vmul.f32 %v40_v0, %v37_v9 }
  0x21   :  { %v42_v12 = vmul.f32 %v40_v0, %v39_v10 }
  0x22   :  { %v43_v13 = vmul.f32 1.442695, %v41_v11 }
  0x23   :  { %v45_v14 = vmul.f32 1.442695, %v42_v12 }
  0x24   :  { %117 = vpow2.f32 %v43_v13 }
  0x25   :  { %119 = vpow2.f32 %v45_v14 }
  0x31   :  { %v118_v15 = vpop.eup %117 }
  0x32   :  { %v120_v16 = vpop.eup %119 }
  0x33   :  { %v48_v17 = vadd.f32 %v120_v16, %v118_v15 }
  0x35   :  { %49 = vadd.xlane.f32.xlu0 %v48_v17 }
  0x4d   :  { %s105_s0 = spop %104 }
  0x4e   :  { %v64_v25 = vstv %s105_s0 }
  0xbe   :  { %v50_v20 = vpop.xlane.xlu0 %49 }
  0xbf   :  { %v51_v21 = vadd.f32 %v50_v20, %v47_v19 }
  0xc1   :  { %53 = vst.msk [vmem:[#allocation2] sm:$0xff] %vm29_vm0, %v51_v21 }
  0xc8   :  { %v57_v22 = vld [vmem:[#allocation2] sm:$0xff] }
  0xc9   :  { %v58_v23 = vmul.f32 0.00390625, %v57_v22 }
  0xcb   :  { %121 = vlog2.f32 %v58_v23 }
  0xd8   :  { %v122_v24 = vpop.eup %121 }
  0xd9   :  { %v60_v26 = vmul.f32 0.6931472, %v122_v24 }
  0xdb   :  { %v65_v27 = vmul.f32 %v64_v25, %v60_v26 }
  0xdd   :  { %v66_v28 = vmul.f32 1.442695, %v65_v27 }
  0xdf   :  { %123 = vpow2.f32 %v66_v28 }
  0xec   :  { %v124_v29 = vpop.eup %123 }
  0xed   :  { %75 = vperm.xlu0 %110, %v124_v29  }
 0x168   :  { %v76_v33 = vpop.permute.xlu0 %75 }
 0x169   :  { %v78_v34 = vsel %vm72_vm1, %v76_v33, 0.0 }
 0x16a   :  { %v80_v35 = vsel %vm79_vm2, %v78_v34, 0.0 }
 0x16b   :  { %v81_v36 = vrot.slane %v80_v35, 4 }
 0x16d   :  { %v82_v37 = vadd.f32 %v81_v36, %v80_v35 }
 0x16f   :  { %v83_v38 = vrot.slane %v82_v37, 2 }
 0x171   :  { %v84_v39 = vadd.f32 %v83_v38, %v82_v37 }
 0x173   :  { %v85_v40 = vrot.slane %v84_v39, 1 }
 0x175   :  { %v86_v41 = vadd.f32 %v85_v40, %v84_v39 }
 0x177   :  { %88 = vst.msk [vmem:[#allocation7] sm:$0x1] %vm87_vm3, %v86_v41 }
 0x178   :  { %156 = shalt.err (!%p153_p9)
}
 0x179   :  { %98 = dma.vmem_to_hbm [thread:$0]  %s96_s16, 16, %s201_s2, [#allocation6]  }
 0x17a   :  { %167 = dma.done.wait [#allocation6], 16  }
 0x17b   :  { %168 = vsyncadd [#allocation6], 4294967280 }
 0x17c   :  { %102 = vsyncpa [#allocation5], 1 }
 0x17d   :  { %103 = vsyncpa [#allocation6], 1 }

</bundles_post_ra>
